<compile_context>
chip_gen: v6e
topology: v6e:2x2x1
jax: 0.10.0
libtpu: 0.0.40
codegen_flags: <defaults>
</compile_context>

<pallas_src>
import functools

import jax
import jax.numpy as jnp
from jax.experimental import pallas as pl
from jax.experimental.pallas import tpu as pltpu


_VMEM_LIMIT = 48 * 1024 * 1024   # explicit scoped-VMEM budget (fits v5e/v6e/v7x)


# -----------------------------------------------------------------------------
# helpers
# -----------------------------------------------------------------------------

def _tile(dim, target, align):
    """Largest divisor of `dim` that is <= target and a multiple of `align`,
    preferring 256-aligned tiles (v6e/v7x MXU is 256x256); falls back to the
    full dim (full-extent blocks are always legal)."""
    if dim <= target:
        return dim
    if align <= 256:
        t = (target // 256) * 256
        while t >= 256:
            if dim % t == 0:
                return t
            t -= 256
    t = (target // align) * align
    while t >= align:
        if dim % t == 0:
            return t
        t -= align
    return dim


def _gelu(y):
    # TODO(synk): tanh-approx GELU (gelu_new); HF Roberta default is exact erf GELU.
    return 0.5 * y * (1.0 + jnp.tanh(0.7978845608028654 * (y + 0.044715 * y * y * y)))


# -----------------------------------------------------------------------------
# Fused tiled linear kernel: (matmul + bias [+ gelu] [+ residual] [+ layernorm])
# -----------------------------------------------------------------------------

def _linear_kernel(x_ref, w_ref, b_ref, *rest,
                   activation, has_residual, has_ln, eps, nk):
    i = 0
    r_ref = g_ref = b2_ref = None
    if has_residual:
        r_ref = rest[i]; i += 1
    if has_ln:
        g_ref, b2_ref = rest[i], rest[i + 1]; i += 2
    o_ref, acc_ref = rest[i], rest[i + 1]

    k = pl.program_id(2)

    @pl.when(k == 0)
    def _():
        acc_ref[...] = jnp.zeros_like(acc_ref)

    # bf16 MXU matmul, f32 accumulation (astype is a no-op when x is already bf16)
    acc_ref[...] += jnp.dot(x_ref[...].astype(jnp.bfloat16), w_ref[...],
                            preferred_element_type=jnp.float32)

    @pl.when(k == nk - 1)
    def _():
        y = acc_ref[...] + b_ref[...]
        if activation == "gelu":
            y = _gelu(y)
        if has_residual:
            y = y + r_ref[...].astype(jnp.float32)
        if has_ln:
            # one-pass variance: E[y^2] - mean^2 (two independent row reductions)
            mean = jnp.mean(y, axis=-1, keepdims=True)
            var = jnp.mean(y * y, axis=-1, keepdims=True) - mean * mean
            y = (y - mean) * jax.lax.rsqrt(var + eps) * g_ref[...] + b2_ref[...]
        o_ref[...] = y.astype(o_ref.dtype)


def linear(x, w, b, *, activation="none", residual=None, ln=None,
           out_dtype=jnp.bfloat16, tm=256, tn=512, tk=512):
    """x:(M,K) bf16/f32, w:(K,N) bf16, b:(N,) f32 -> (M,N) out_dtype.
    Optionally fuses GELU, residual add (M,N) and row LayerNorm (gamma,beta,eps)."""
    M, K = x.shape
    Kw, N = w.shape
    assert K == Kw
    if ln is not None:
        tn = N                 # LN needs the whole row
        tm = min(tm, 128)      # keep acc/residual/out tiles inside v7x's 64 MiB VMEM
    else:
        tn = _tile(N, tn, 128)
    tm = _tile(M, tm, 8)
    tk = _tile(K, tk, 128)
    grid = (M // tm, N // tn, K // tk)
    nk = grid[2]

    in_specs = [
        pl.BlockSpec((tm, tk), lambda i, j, k: (i, k)),
        pl.BlockSpec((tk, tn), lambda i, j, k: (k, j)),
        pl.BlockSpec((1, tn), lambda i, j, k: (0, j)),
    ]
    args = [x, w, b.reshape(1, N)]
    if residual is not None:
        in_specs.append(pl.BlockSpec((tm, tn), lambda i, j, k: (i, j)))
        args.append(residual)
    eps = 1e-5
    if ln is not None:
        gamma, beta, eps = ln
        in_specs += [pl.BlockSpec((1, tn), lambda i, j, k: (0, j)),
                     pl.BlockSpec((1, tn), lambda i, j, k: (0, j))]
        args += [gamma.reshape(1, N), beta.reshape(1, N)]

    kernel = functools.partial(
        _linear_kernel, activation=activation,
        has_residual=residual is not None, has_ln=ln is not None,
        eps=eps, nk=nk)

    return pl.pallas_call(
        kernel,
        out_shape=jax.ShapeDtypeStruct((M, N), out_dtype),
        grid=grid,
        in_specs=in_specs,
        out_specs=pl.BlockSpec((tm, tn), lambda i, j, k: (i, j)),
        scratch_shapes=[pltpu.VMEM((tm, tn), jnp.float32)],
        compiler_params=pltpu.CompilerParams(
            dimension_semantics=("parallel", "parallel", "arbitrary"),
            vmem_limit_bytes=_VMEM_LIMIT),
    )(*args)


# -----------------------------------------------------------------------------
# Standalone layernorm (embeddings only), tiled over rows, bf16 output
# -----------------------------------------------------------------------------

def _layernorm_kernel(x_ref, g_ref, b_ref, o_ref, *, eps):
    x = x_ref[...]
    mean = jnp.mean(x, axis=-1, keepdims=True)
    var = jnp.mean(x * x, axis=-1, keepdims=True) - mean * mean
    y = (x - mean) * jax.lax.rsqrt(var + eps) * g_ref[...] + b_ref[...]
    o_ref[...] = y.astype(o_ref.dtype)


def layernorm(x, gamma, beta, eps=1e-5, tm=512, out_dtype=jnp.bfloat16):
    M, H = x.shape
    tm = _tile(M, tm, 8)
    return pl.pallas_call(
        functools.partial(_layernorm_kernel, eps=eps),
        out_shape=jax.ShapeDtypeStruct((M, H), out_dtype),
        grid=(M // tm,),
        in_specs=[pl.BlockSpec((tm, H), lambda i: (i, 0)),
                  pl.BlockSpec((1, H), lambda i: (0, 0)),
                  pl.BlockSpec((1, H), lambda i: (0, 0))],
        out_specs=pl.BlockSpec((tm, H), lambda i: (i, 0)),
        compiler_params=pltpu.CompilerParams(
            dimension_semantics=("parallel",), vmem_limit_bytes=_VMEM_LIMIT),
    )(x, gamma.reshape(1, H), beta.reshape(1, H))


# -----------------------------------------------------------------------------
# Flash attention: online softmax, grid (B, q-tiles, kv-tiles), reads the fused
# (B, S, 3H) QKV buffer directly and writes (B, S, H) -- no HBM transposes.
# -----------------------------------------------------------------------------

def _flash_attn_kernel(q_ref, kv_ref, m_ref, o_ref, m_sc, l_sc, acc_sc,
                       *, nh, dh, scale, nkv):
    ki = pl.program_id(2)
    H = nh * dh

    @pl.when(ki == 0)
    def _():
        m_sc[...] = jnp.full_like(m_sc, -jnp.inf)
        l_sc[...] = jnp.zeros_like(l_sc)
        acc_sc[...] = jnp.zeros_like(acc_sc)

    qkv_q = q_ref[0]                       # (tq, 3H)  bf16
    qkv_kv = kv_ref[0]                     # (tkv, 3H) bf16
    neg = (m_ref[0] - 1.0) * 1e9           # (1, tkv)  f32 additive mask

    # Static unroll over heads: per-head 2D slices / transposes stay on the XLU,
    # matmuls on the MXU; no full (NH, S, S) score tensor is ever materialized.
    for h in range(nh):
        q_h = qkv_q[:, h * dh:(h + 1) * dh]                    # (tq, dh)
        k_h = qkv_kv[:, H + h * dh:H + (h + 1) * dh]           # (tkv, dh)
        v_h = qkv_kv[:, 2 * H + h * dh:2 * H + (h + 1) * dh]   # (tkv, dh)

        s = jnp.dot(q_h, k_h.T, preferred_element_type=jnp.float32) * scale
        s = s + neg                                            # (tq, tkv) f32

        m_prev = m_sc[h]                                       # (tq, 1)
        m_new = jnp.maximum(m_prev, jnp.max(s, axis=-1, keepdims=True))
        alpha = jnp.exp(m_prev - m_new)
        p = jnp.exp(s - m_new)
        l_sc[h] = alpha * l_sc[h] + jnp.sum(p, axis=-1, keepdims=True)
        acc_sc[h] = alpha * acc_sc[h] + jnp.dot(
            p.astype(jnp.bfloat16), v_h, preferred_element_type=jnp.float32)
        m_sc[h] = m_new

    @pl.when(ki == nkv - 1)
    def _():
        ctx = [(acc_sc[h] * pl.reciprocal(l_sc[h], approx=True)).astype(o_ref.dtype)
               for h in range(nh)]
        # single lane-dense (tq, H) store, already in (B, S, H) layout
        o_ref[0] = jnp.concatenate(ctx, axis=-1)


def flash_attention(qkv, attn_mask, *, nh, tq=256, tkv=256):
    """qkv: (B, S, 3H) bf16 from the fused QKV projection; attn_mask: (B, 1, S) f32.
    Returns the attention context in (B, S, H) layout, bf16."""
    B, S, H3 = qkv.shape
    H = H3 // 3
    dh = H // nh
    scale = 1.0 / (dh ** 0.5)
    tq = _tile(S, tq, 8)
    tkv = _tile(S, tkv, 128)   # kv tile is the mask's last dim -> 128-aligned or full
    grid = (B, S // tq, S // tkv)

    kernel = functools.partial(_flash_attn_kernel, nh=nh, dh=dh, scale=scale,
                               nkv=grid[2])
    # TODO(synk): at production H, use per-head lane-sliced BlockSpecs on the qkv
    # buffer (column blocks h, NH+h, 2NH+h of width Dh) to avoid re-reading the
    # unused columns of each Q / KV tile.
    return pl.pallas_call(
        kernel,
        out_shape=jax.ShapeDtypeStruct((B, S, H), jnp.bfloat16),
        grid=grid,
        in_specs=[
            pl.BlockSpec((1, tq, H3), lambda b, qi, ki: (b, qi, 0)),   # Q rows
            pl.BlockSpec((1, tkv, H3), lambda b, qi, ki: (b, ki, 0)),  # K/V rows
            pl.BlockSpec((1, 1, tkv), lambda b, qi, ki: (b, 0, ki)),   # mask
        ],
        out_specs=pl.BlockSpec((1, tq, H), lambda b, qi, ki: (b, qi, 0)),
        scratch_shapes=[pltpu.VMEM((nh, tq, 1), jnp.float32),   # m (running max)
                        pltpu.VMEM((nh, tq, 1), jnp.float32),   # l (running sum)
                        pltpu.VMEM((nh, tq, dh), jnp.float32)], # acc
        compiler_params=pltpu.CompilerParams(
            dimension_semantics=("parallel", "parallel", "arbitrary"),
            vmem_limit_bytes=_VMEM_LIMIT),
    )(qkv, qkv, attn_mask)


# -----------------------------------------------------------------------------
# Roberta-like backbone (glue in plain JAX, hot paths in Pallas)
# -----------------------------------------------------------------------------

def encoder_forward(params, tokens, attn_mask, cfg):
    B, S = tokens.shape
    H, NH = cfg["hidden"], cfg["heads"]

    # embeddings (gather is glue)
    # TODO(synk): real Roberta offsets position ids by padding_idx+1; synthetic
    # backbone uses arange(S) directly.
    x = params["word_emb"][tokens] + params["pos_emb"][jnp.arange(S)][None, :, :]
    x = layernorm(x.reshape(B * S, H), params["emb_ln_g"], params["emb_ln_b"])  # (B*S, H) bf16

    mask3 = attn_mask.astype(jnp.float32).reshape(B, 1, S)

    for lyr in params["layers"]:
        # fused QKV projection: one (H, 3H) matmul, bf16 activations throughout
        qkv = linear(x, lyr["wqkv"], lyr["bqkv"])                    # (B*S, 3H) bf16

        # flash attention reads (B, S, 3H) directly and writes (B, S, H):
        # only free reshapes below, no HBM transposes.
        ctx = flash_attention(qkv.reshape(B, S, 3 * H), mask3, nh=NH)
        ctx = ctx.reshape(B * S, H)

        # output projection + residual + layernorm in ONE pallas_call
        x_attn = linear(ctx, lyr["wo"], lyr["bo"],
                        residual=x, ln=(lyr["ln1_g"], lyr["ln1_b"], 1e-5))

        # FFN: dense+gelu, then dense + residual + layernorm (fused)
        ffn = linear(x_attn, lyr["w1"], lyr["b1"], activation="gelu")
        x = linear(ffn, lyr["w2"], lyr["b2"],
                   residual=x_attn, ln=(lyr["ln2_g"], lyr["ln2_b"], 1e-5))

    return x.reshape(B, S, H)  # last hidden state, bf16


def post_model_forward(params, cfg,
                       batch_corrupt_tokens, batch_corrupt_mask_positions,
                       batch_urc_inputs, batch_mlm_attentions, batch_urc_attentions):
    B, S = batch_corrupt_tokens.shape
    H, V = cfg["hidden"], cfg["vocab"]
    _, M = batch_corrupt_mask_positions.shape

    # --- single encoder pass for both branches: weights streamed from HBM once ---
    tokens = jnp.concatenate([batch_corrupt_tokens, batch_urc_inputs], axis=0)    # (2B, S)
    attns = jnp.concatenate([batch_mlm_attentions, batch_urc_attentions], axis=0)  # (2B, S)
    hidden = encoder_forward(params, tokens, attns, cfg)                           # (2B, S, H) bf16
    corrupt_hidden, urc_hidden = hidden[:B], hidden[B:]

    # --- MLM branch: gather hidden states at mask positions BEFORE vocab projection ---
    gathered = jnp.take_along_axis(
        corrupt_hidden, batch_corrupt_mask_positions[..., None], axis=1)   # (B, M, H)
    gathered = gathered.reshape(B * M, H)

    # MLM head: dense + gelu + layernorm fused (bf16), then vocab decoder (f32 logits).
    h = linear(gathered, params["mlm_dense_w"], params["mlm_dense_b"],
               activation="gelu", ln=(params["mlm_ln_g"], params["mlm_ln_b"], 1e-5))
    mask_logits = linear(h, params["mlm_dec_w"], params["mlm_dec_b"],
                         out_dtype=jnp.float32, tn=2048, tk=1024)          # (B*M, V)
    mask_logits = mask_logits.reshape(B, M, V)
    corrupt_mask_outputs = [mask_logits[idx] for idx in range(B)]          # list of (M, V)

    # --- URC branch: last hidden state -> CLS row -> Linear(H, 3) ---
    cls_hidden = urc_hidden[:, 0, :]                                        # (B, H) bf16
    urc_logits_pad = linear(cls_hidden, params["W_w_pad"], params["W_b_pad"],
                            out_dtype=jnp.float32)                          # (B, 128) lane-dense
    urc_cls_outputs = urc_logits_pad[:, :3]                                  # (B, 3)

    return corrupt_mask_outputs, urc_cls_outputs


# -----------------------------------------------------------------------------
# Deterministic parameter init (matmul weights bf16, norms/bias f32)
# -----------------------------------------------------------------------------

def init_params(key, cfg):
    H, F, V, P = cfg["hidden"], cfg["ffn"], cfg["vocab"], cfg["max_pos"]

    def nxt():
        nonlocal key
        key, sub = jax.random.split(key)
        return sub

    def dense_f32(shape):
        return 0.02 * jax.random.normal(nxt(), shape, dtype=jnp.float32)

    def dense(shape):
        return dense_f32(shape).astype(jnp.bfloat16)

    w_urc = dense_f32((H, 3))
    params = {
        "word_emb": dense_f32((V, H)),
        "pos_emb": dense_f32((P, H)),
        "emb_ln_g": jnp.ones((H,), jnp.float32),
        "emb_ln_b": jnp.zeros((H,), jnp.float32),
        "layers": [],
        "mlm_dense_w": dense((H, H)),
        "mlm_dense_b": jnp.zeros((H,), jnp.float32),
        "mlm_ln_g": jnp.ones((H,), jnp.float32),
        "mlm_ln_b": jnp.zeros((H,), jnp.float32),
        "mlm_dec_w": dense((H, V)),
        "mlm_dec_b": jnp.zeros((V,), jnp.float32),
        # URC head padded to 128 output lanes (lane-dense store); cols 3..127 are zero.
        "W_w_pad": jnp.pad(w_urc, ((0, 0), (0, 125))).astype(jnp.bfloat16),
        "W_b_pad": jnp.zeros((128,), jnp.float32),
    }
    for _ in range(cfg["layers"]):
        # fused QKV weight: columns [0:H]=Q, [H:2H]=K, [2H:3H]=V
        params["layers"].append({
            "wqkv": dense((H, 3 * H)), "bqkv": jnp.zeros((3 * H,), jnp.float32),
            "wo": dense((H, H)), "bo": jnp.zeros((H,), jnp.float32),
            "ln1_g": jnp.ones((H,), jnp.float32), "ln1_b": jnp.zeros((H,), jnp.float32),
            "w1": dense((H, F)), "b1": jnp.zeros((F,), jnp.float32),
            "w2": dense((F, H)), "b2": jnp.zeros((H,), jnp.float32),
            "ln2_g": jnp.ones((H,), jnp.float32), "ln2_b": jnp.zeros((H,), jnp.float32),
        })
    return params


# -----------------------------------------------------------------------------
# Main
# -----------------------------------------------------------------------------

if __name__ == "__main__":
    cfg = dict(vocab=64, hidden=32, heads=2, ffn=64, layers=2, max_pos=16)
    B, S, M = 2, 8, 2   # batch, seq len, mask positions per example

    key = jax.random.PRNGKey(0)
    k_params, k_tok, k_urc = jax.random.split(key, 3)

    params = init_params(k_params, cfg)

    batch_corrupt_tokens = jax.random.randint(k_tok, (B, S), 0, cfg["vocab"], dtype=jnp.int32)
    batch_urc_inputs = jax.random.randint(k_urc, (B, S), 0, cfg["vocab"], dtype=jnp.int32)
    batch_corrupt_mask_positions = jnp.array([[1, 3], [2, 5]], dtype=jnp.int32)   # (B, M)
    batch_mlm_attentions = jnp.array([[1, 1, 1, 1, 1, 1, 1, 0],
                                      [1, 1, 1, 1, 1, 1, 0, 0]], dtype=jnp.float32)
    batch_urc_attentions = jnp.ones((B, S), dtype=jnp.float32)

    corrupt_mask_outputs, urc_cls_outputs = post_model_forward(
        params, cfg,
        batch_corrupt_tokens, batch_corrupt_mask_positions,
        batch_urc_inputs, batch_mlm_attentions, batch_urc_attentions)

    for t in corrupt_mask_outputs:
        jax.block_until_ready(t)
    jax.block_until_ready(urc_cls_outputs)

    assert corrupt_mask_outputs[0].shape == (M, cfg["vocab"])
    assert urc_cls_outputs.shape == (B, 3)
    print("KERNEL_OK")
</pallas_src>

<mosaic_0001>
module attributes {stable_mosaic.version = 11 : i64} {
  func.func @_layernorm_kernel(%arg0: i32, %arg1: memref<32x32xf32, #tpu.memory_space<vmem>>, %arg2: memref<1x32xf32, #tpu.memory_space<vmem>>, %arg3: memref<1x32xf32, #tpu.memory_space<vmem>>, %arg4: memref<32x32xbf16, #tpu.memory_space<vmem>>) attributes {dimension_semantics = [#tpu.dimension_semantics<parallel>], iteration_bounds = array<i64: 1>, scalar_prefetch = 0 : i64, scratch_operands = 0 : i64, tpu.core_type = #tpu.core_type<tc>, window_params = [{transform_indices = @transform_0, window_bounds = array<i64: 32, 32>}, {pipeline_mode = #tpu.pipeline_mode<synchronous>, transform_indices = @transform_1, window_bounds = array<i64: 1, 32>}, {pipeline_mode = #tpu.pipeline_mode<synchronous>, transform_indices = @transform_2, window_bounds = array<i64: 1, 32>}, {transform_indices = @transform_3, window_bounds = array<i64: 32, 32>}]} {
    %c0 = arith.constant 0 : index
    %c0_0 = arith.constant 0 : index
    %0 = vector.load %arg1[%c0, %c0_0] : memref<32x32xf32, #tpu.memory_space<vmem>>, vector<32x32xf32>
    %cst = arith.constant dense<0.000000e+00> : vector<32xf32>
    %1 = vector.multi_reduction <add>, %0, %cst [1] : vector<32x32xf32> to vector<32xf32>
    %2 = vector.shape_cast %1 : vector<32xf32> to vector<32x1xf32>
    %cst_1 = arith.constant 3.200000e+01 : f32
    %3 = vector.broadcast %cst_1 : f32 to vector<32x1xf32>
    %4 = arith.divf %2, %3 : vector<32x1xf32>
    %5 = arith.mulf %0, %0 : vector<32x32xf32>
    %cst_2 = arith.constant dense<0.000000e+00> : vector<32xf32>
    %6 = vector.multi_reduction <add>, %5, %cst_2 [1] : vector<32x32xf32> to vector<32xf32>
    %7 = vector.shape_cast %6 : vector<32xf32> to vector<32x1xf32>
    %cst_3 = arith.constant 3.200000e+01 : f32
    %8 = vector.broadcast %cst_3 : f32 to vector<32x1xf32>
    %9 = arith.divf %7, %8 : vector<32x1xf32>
    %10 = arith.mulf %4, %4 : vector<32x1xf32>
    %11 = arith.subf %9, %10 : vector<32x1xf32>
    %12 = vector.broadcast %4 : vector<32x1xf32> to vector<32x32xf32>
    %13 = arith.subf %0, %12 : vector<32x32xf32>
    %cst_4 = arith.constant 9.99999974E-6 : f32
    %14 = vector.broadcast %cst_4 : f32 to vector<32x1xf32>
    %15 = arith.addf %11, %14 : vector<32x1xf32>
    %16 = math.rsqrt %15 : vector<32x1xf32>
    %17 = vector.broadcast %16 : vector<32x1xf32> to vector<32x32xf32>
    %18 = arith.mulf %13, %17 : vector<32x32xf32>
    %c0_5 = arith.constant 0 : index
    %c0_6 = arith.constant 0 : index
    %19 = vector.load %arg2[%c0_5, %c0_6] : memref<1x32xf32, #tpu.memory_space<vmem>>, vector<1x32xf32>
    %20 = vector.broadcast %19 : vector<1x32xf32> to vector<32x32xf32>
    %21 = arith.mulf %18, %20 : vector<32x32xf32>
    %c0_7 = arith.constant 0 : index
    %c0_8 = arith.constant 0 : index
    %22 = vector.load %arg3[%c0_7, %c0_8] : memref<1x32xf32, #tpu.memory_space<vmem>>, vector<1x32xf32>
    %23 = vector.broadcast %22 : vector<1x32xf32> to vector<32x32xf32>
    %24 = arith.addf %21, %23 : vector<32x32xf32>
    %25 = arith.truncf %24 : vector<32x32xf32> to vector<32x32xbf16>
    %c0_9 = arith.constant 0 : index
    %c0_10 = arith.constant 0 : index
    %26 = vector.load %arg4[%c0_9, %c0_10] : memref<32x32xbf16, #tpu.memory_space<vmem>>, vector<32x32xbf16>
    tpu.vector_store %arg4[%c0_9, %c0_10], %25 {strides = array<i32>} : memref<32x32xbf16, #tpu.memory_space<vmem>>, vector<32x32xbf16>,
    return
  }
  func.func @transform_0(%arg0: i32) -> (i32, i32) {
    %c0_i32 = arith.constant 0 : i32
    %c0_i32_0 = arith.constant 0 : i32
    return %arg0, %c0_i32 : i32, i32
  }
  func.func @transform_1(%arg0: i32) -> (i32, i32) {
    %c0_i32 = arith.constant 0 : i32
    %c0_i32_0 = arith.constant 0 : i32
    %c0_i32_1 = arith.constant 0 : i32
    return %c0_i32, %c0_i32_0 : i32, i32
  }
  func.func @transform_2(%arg0: i32) -> (i32, i32) {
    %c0_i32 = arith.constant 0 : i32
    %c0_i32_0 = arith.constant 0 : i32
    %c0_i32_1 = arith.constant 0 : i32
    return %c0_i32, %c0_i32_0 : i32, i32
  }
  func.func @transform_3(%arg0: i32) -> (i32, i32) {
    %c0_i32 = arith.constant 0 : i32
    %c0_i32_0 = arith.constant 0 : i32
    return %arg0, %c0_i32 : i32, i32
  }
}

</mosaic_0001>

<bundles_post_ra>
// kernel: tpu_custom_call.1
= control target key start
LH: loop header
LB: loop body
LE: loop exit
PB: predicated region body
PF: predicated region fallthrough
CT: control target
= control target key end

     0   :  { %8 = vsyncpa [#allocation3], 0  ;;  %s281_s0 = inlined_call_operand.hbm [shape: f32[32,32], index: 0, kind: input, shape index: {}]   ;;  %s282_s1 = inlined_call_operand.vmem [shape: f32[1,32], index: 1, kind: input, shape index: {}]   ;;  %s283_s2 = inlined_call_operand.vmem [shape: f32[1,32], index: 2, kind: input, shape index: {}]   ;;  %s284_s3 = inlined_call_operand.hbm [shape: bf16[32,32], index: 3, kind: output, shape index: {}]  }
   0x1   :  { %9 = vsyncpa [#allocation4], 0  ;;  %s223_s12 = smov [#allocation2]  }
   0x2   :  { %s15_s13 = sshll.u32 %s223_s12, 4  ;;  %s16_s13 = int_to_ptr.vmem [resolvable:$true] %s15_s13 }
   0x3   :  { %s187_s14 = scalar_lea.vmem %s16_s13, 512  ;;  %p192_p1 = scmp.lt.s32.totalorder %s16_s13, %s16_s13 }
   0x4   :  { %p188_p0 = scmp.ne.s32.totalorder %s16_s13, %s187_s14  ;;  %p193_p2 = scmp.lt.s32.totalorder %s187_s14, %s187_s14 }
   0x6   :  { %p194_p3 = por %p193_p2, %p192_p1 }
   0x8   :  { %p195_p4 = pnand %p194_p3, %p188_p0 }
   0xa   :  { %198 = shalt.err (!%p195_p4)
}
   0xb   :  { %s224_s15 = smov 128   ;;  %s225_s16 = smov 8  }
   0xc   :  { %21 = dma.hbm_to_vmem [thread:$0]  %s281_s0, 512, %s16_s13, [#allocation3], %s224_s15, %s224_s15, %s225_s16  }
   0xd   :  { %219 = dma.done.wait [#allocation3], 512  }
   0xe   :  { %220 = vsyncadd [#allocation3], 4294966784  ;;  %vm33_vm0 = vcmask 261120   ;;  %v252_v0 = vld [vmem:[#allocation2 + $0x10] sm:$0xff]  ;;  %v29_v1 = vld [vmem:[#allocation2] sm:$0xff]  ;;  %vm133_vm1 = vcmask 257024  }
   0xf   :  { %v254_v2 = vld [vmem:[#allocation2 + $0x18] sm:$0xff]  ;;  %v40_v3 = vsel %vm33_vm0, %v252_v0, 0.0  ;;  %v34_v4 = vsel %vm33_vm0, %v29_v1, 0.0  ;;  %v30_v5 = vld [vmem:[#allocation2 + $0x8] sm:$0xff]  ;;  %v51_v9 = vmul.f32 %v29_v1, %v29_v1  ;;  %v53_v13 = vmul.f32 %v252_v0, %v252_v0  ;;  %v155_v47 = vld [vmem:[%s282_s1] ss:$0 sm:$0xff] }
  0x10   :  { %41 = vadd.xlane.f32.xlu1 %v40_v3  ;;  %35 = vadd.xlane.f32.xlu0 %v34_v4  ;;  %v43_v6 = vsel %vm33_vm0, %v254_v2, 0.0  ;;  %v37_v7 = vsel %vm33_vm0, %v30_v5, 0.0  ;;  %v52_v8 = vmul.f32 %v30_v5, %v30_v5  ;;  %v54_v12 = vmul.f32 %v254_v2, %v254_v2  ;;  %v156_v51 = vld [vmem:[%s283_s2] ss:$0 sm:$0xff]  ;;  %s226_s1 = smov [#allocation5]  }
  0x11   :  { %v55_v11 = vsel %vm33_vm0, %v51_v9, 0.0  ;;  %v61_v15 = vsel %vm33_vm0, %v53_v13, 0.0  ;;  %s143_s22 = sshll.u32 %s226_s1, 4  ;;  %s144_s22 = int_to_ptr.vmem [resolvable:$true] %s143_s22 }
  0x12   :  { %v58_v10 = vsel %vm33_vm0, %v52_v8, 0.0  ;;  %v64_v14 = vsel %vm33_vm0, %v54_v12, 0.0  ;;  %s199_s2 = scalar_lea.vmem %s144_s22, 256  ;;  %p204_p6 = scmp.lt.s32.totalorder %s144_s22, %s144_s22 }
  0x13   :  { %p200_p5 = scmp.ne.s32.totalorder %s144_s22, %s199_s2  ;;  %p205_p7 = scmp.lt.s32.totalorder %s199_s2, %s199_s2 }
  0x14   :  { %44 = vadd.xlane.f32.xlu1 %v43_v6  ;;  %38 = vadd.xlane.f32.xlu0 %v37_v7 }
  0x15   :  { %p206_p8 = por %p205_p7, %p204_p6 }
  0x17   :  { %p207_p9 = pnand %p206_p8, %p200_p5 }
  0x18   :  { %59 = vadd.xlane.f32.xlu1 %v58_v10  ;;  %56 = vadd.xlane.f32.xlu0 %v55_v11 }
  0x1c   :  { %65 = vadd.xlane.f32.xlu1 %v64_v14  ;;  %62 = vadd.xlane.f32.xlu0 %v61_v15 }
  0x99   :  { %v42_v16 = vpop.xlane.xlu1 %41  ;;  %v36_v17 = vpop.xlane.xlu0 %35 }
  0x9a   :  { %v47_v20 = vmul.f32 0.03125, %v36_v17  ;;  %v49_v22 = vmul.f32 0.03125, %v42_v16 }
  0x9c   :  { %v71_v26 = vmul.f32 %v47_v20, %v47_v20  ;;  %v73_v32 = vmul.f32 %v49_v22, %v49_v22  ;;  %v79_v46 = vsub.f32 %v29_v1, %v47_v20  ;;  %v81_v55 = vsub.f32 %v252_v0, %v49_v22 }
  0x9d   :  { %v45_v18 = vpop.xlane.xlu1 %44  ;;  %v39_v19 = vpop.xlane.xlu0 %38 }
  0x9e   :  { %v48_v21 = vmul.f32 0.03125, %v39_v19  ;;  %v50_v23 = vmul.f32 0.03125, %v45_v18 }
  0xa0   :  { %v72_v27 = vmul.f32 %v48_v21, %v48_v21  ;;  %v74_v33 = vmul.f32 %v50_v23, %v50_v23  ;;  %v80_v44 = vsub.f32 %v30_v5, %v48_v21  ;;  %v82_v52 = vsub.f32 %v254_v2, %v50_v23 }
  0xa1   :  { %v60_v24 = vpop.xlane.xlu1 %59  ;;  %v57_v25 = vpop.xlane.xlu0 %56 }
  0xa2   :  { %v68_v28 = vmul.f32 0.03125, %v60_v24  ;;  %v67_v29 = vmul.f32 0.03125, %v57_v25 }
  0xa4   :  { %v76_v30 = vsub.f32 %v68_v28, %v72_v27  ;;  %v75_v31 = vsub.f32 %v67_v29, %v71_v26 }
  0xa5   :  { %v66_v34 = vpop.xlane.xlu1 %65  ;;  %v63_v35 = vpop.xlane.xlu0 %62 }
  0xa6   :  { %v84_v36 = vadd.f32 1e-05, %v76_v30  ;;  %v83_v37 = vadd.f32 1e-05, %v75_v31  ;;  %v70_v38 = vmul.f32 0.03125, %v66_v34  ;;  %v69_v39 = vmul.f32 0.03125, %v63_v35 }
  0xa8   :  { %171 = vrsqrt.f32 %v84_v36  ;;  %v78_v40 = vsub.f32 %v70_v38, %v74_v33  ;;  %v77_v41 = vsub.f32 %v69_v39, %v73_v32 }
  0xa9   :  { %173 = vrsqrt.f32 %v83_v37 }
  0xaa   :  { %v86_v42 = vadd.f32 1e-05, %v78_v40  ;;  %v85_v43 = vadd.f32 1e-05, %v77_v41 }
  0xac   :  { %175 = vrsqrt.f32 %v86_v42 }
  0xad   :  { %177 = vrsqrt.f32 %v85_v43 }
  0xb5   :  { %v172_v45 = vpop.eup %171 }
  0xb6   :  { %v174_v48 = vpop.eup %173  ;;  %v92_v49 = vmul.f32 %v172_v45, %v80_v44 }
  0xb7   :  { %v91_v50 = vmul.f32 %v174_v48, %v79_v46 }
  0xb8   :  { %v103_v53 = vmul.f32 %v155_v47, %v92_v49 }
  0xb9   :  { %v176_v54 = vpop.eup %175  ;;  %v102_v56 = vmul.f32 %v155_v47, %v91_v50 }
  0xba   :  { %v178_v57 = vpop.eup %177  ;;  %v94_v58 = vmul.f32 %v176_v54, %v82_v52  ;;  %v114_v59 = vadd.f32 %v156_v51, %v103_v53 }
  0xbb   :  { %v93_v60 = vmul.f32 %v178_v57, %v81_v55  ;;  %v113_v61 = vadd.f32 %v156_v51, %v102_v56 }
  0xbc   :  { %v105_v62 = vmul.f32 %v155_v47, %v94_v58  ;;  %v162_v63 = vpack.c.bf16 %v114_v59, %v114_v59 }
  0xbd   :  { %v104_v1 = vmul.f32 %v155_v47, %v93_v60  ;;  %v161_v3 = vpack.c.bf16 %v113_v61, %v113_v61 }
  0xbe   :  { %v116_v4 = vadd.f32 %v156_v51, %v105_v62  ;;  %135 = vst.msk [vmem:[#allocation5 + $0x4] sm:$0xf] %vm133_vm1, %v162_v63 }
  0xbf   :  { %v115_v2 = vadd.f32 %v156_v51, %v104_v1  ;;  %134 = vst.msk [vmem:[#allocation5] sm:$0xf] %vm133_vm1, %v161_v3 }
  0xc0   :  { %v164_v5 = vpack.c.bf16 %v116_v4, %v116_v4 }
  0xc1   :  { %v163_v0 = vpack.c.bf16 %v115_v2, %v115_v2 }
  0xc2   :  { %137 = vst.msk [vmem:[#allocation5 + $0xc] sm:$0xf] %vm133_vm1, %v164_v5 }
  0xc3   :  { %136 = vst.msk [vmem:[#allocation5 + $0x8] sm:$0xf] %vm133_vm1, %v163_v0 }
  0xc4   :  { %210 = shalt.err (!%p207_p9)
}
  0xc5   :  { %s227_s23 = smov 64   ;;  %s228_s24 = smov 4  }
  0xc6   :  { %149 = dma.vmem_to_hbm [thread:$0]  %s144_s22, 256, %s284_s3, [#allocation4], %s227_s23, %s227_s23, %s228_s24  }
  0xc7   :  { %221 = dma.done.wait [#allocation4], 256  }
  0xc8   :  { %222 = vsyncadd [#allocation4], 4294967040 }
  0xc9   :  { %153 = vsyncpa [#allocation3], 1 }
  0xca   :  { %154 = vsyncpa [#allocation4], 1 }

</bundles_post_ra>
